<compile_context>
chip_gen: v7x
topology: tpu7x:2x2x1
jax: 0.10.0
libtpu: 0.0.40
codegen_flags: <defaults>
</compile_context>

<pallas_src>
import functools

import jax
import jax.numpy as jnp
from jax import lax
from jax.experimental import pallas as pl
from jax.experimental.pallas import tpu as pltpu


def _round_up(x, m):
    return ((x + m - 1) // m) * m


def _conv1d_kernel(x_ref, xh_ref, w_ref, b_ref, o_ref, xwin_ref, *,
                   k_taps, dilation, tt, fuse_taps):
    # x_ref:    (1, TT, C_in)       main input tile
    # xh_ref:   (1, H,  C_in)       halo rows immediately following the main tile
    # w_ref:    (K*C_in, C_out_p)   taps stacked tap-major along the contraction dim
    # b_ref:    (1, C_out_p)
    # o_ref:    (1, TT, C_out_p)
    # xwin_ref: (TT + H, C_in)      VMEM scratch holding the haloed window
    c_in = x_ref.shape[-1]
    if k_taps == 1:
        # Contraction dim is already the full (folded) channel axis: one MXU matmul.
        acc = jnp.dot(x_ref[0], w_ref[...], preferred_element_type=jnp.float32)
    else:
        halo_rows = xh_ref.shape[1]
        # Assemble the haloed window once; every tap read below is then a plain
        # contiguous (possibly sublane-shifted) load from VMEM.
        xwin_ref[pl.ds(0, tt), :] = x_ref[0]
        xwin_ref[pl.ds(tt, halo_rows), :] = xh_ref[0]
        if fuse_taps:
            # Single MXU pass with contraction K*C_in (fills the systolic array,
            # one push/drain instead of K).
            xcat = jnp.concatenate(
                [xwin_ref[pl.ds(k * dilation, tt), :] for k in range(k_taps)],
                axis=-1)
            acc = jnp.dot(xcat, w_ref[...], preferred_element_type=jnp.float32)
        else:
            # C_in not lane-aligned: K accumulating dots on a small f32 accumulator.
            acc = jnp.zeros((tt, w_ref.shape[-1]), jnp.float32)
            for k in range(k_taps):
                acc = acc + jnp.dot(
                    xwin_ref[pl.ds(k * dilation, tt), :],
                    w_ref[pl.ds(k * c_in, c_in), :],
                    preferred_element_type=jnp.float32)
    o_ref[0] = (acc + b_ref[...]).astype(o_ref.dtype)


def conv1d_pallas(x, weight, bias=None, *, stride=1, padding=0, dilation=1):
    """Channels-last 1-D conv matching `Conv.forward`.

    x:      (B, T, C_in)
    weight: (C_out, C_in, K)   (PyTorch nn.Conv1d layout)
    bias:   (C_out,) or None
    returns (B, T_out, C_out)
    """
    B, T, C_in = x.shape
    C_out, c_in_w, K = weight.shape
    assert c_in_w == C_in, (c_in_w, C_in)
    dtype = x.dtype
    itemsize = jnp.dtype(dtype).itemsize
    if bias is None:
        bias = jnp.zeros((C_out,), dtype)

    T_out = (T + 2 * padding - dilation * (K - 1) - 1) // stride + 1
    assert T_out >= 1, "output length must be positive"

    # Conv zero-padding of the time axis (wrapper glue; the conv compute is in-kernel).
    x_pad = jnp.pad(x, ((0, 0), (padding, padding), (0, 0)))

    # (C_out, C_in, K) -> (K*C_in, C_out); row k*C_in + c matches the tap-major channel
    # order the kernel assembles.
    w2d = jnp.transpose(weight, (2, 1, 0)).reshape(K * C_in, C_out)

    if stride > 1:
        # Polyphase gather in the wrapper so the kernel never issues strided sublane loads.
        taps = [
            lax.slice(x_pad,
                      (0, k * dilation, 0),
                      (B, k * dilation + (T_out - 1) * stride + 1, C_in),
                      (1, stride, 1))
            for k in range(K)
        ]
        x_eff = jnp.concatenate(taps, axis=-1)          # (B, T_out, K*C_in)
        k_eff, dil_eff, c_in_eff = 1, 1, K * C_in
    else:
        x_eff = x_pad
        k_eff, dil_eff, c_in_eff = K, dilation, C_in

    # Lane-dense output: pad C_out to a multiple of 128 (unmasked stores), slice it off after.
    c_out_p = _round_up(C_out, 128)
    if c_out_p != C_out:
        w2d = jnp.pad(w2d, ((0, 0), (0, c_out_p - C_out)))
        bias = jnp.pad(bias, (0, c_out_p - C_out))
    w2d = w2d.astype(dtype)
    b2d = bias.reshape(1, c_out_p).astype(dtype)

    # ---- Time tiling: bound VMEM (f32 acc <= 512 KiB, gathered operand <= 2 MiB). ----
    halo = (k_eff - 1) * dil_eff
    H = max(8, _round_up(halo, 8))              # halo block rows, sublane aligned
    tt = 512
    while tt > 8 and (tt * c_out_p * 4 > (512 << 10)
                      or tt * k_eff * c_in_eff * itemsize > (2 << 20)):
        tt //= 2
    tt = min(tt, _round_up(T_out, 8))
    tt = _round_up(_round_up(tt, 8), H)         # halo BlockSpec requires H | TT
    nt = pl.cdiv(T_out, tt)
    hb = tt // H                                # halo blocks per time tile

    # Pad time so every (main, halo) block pair is in range; the tail rows are sliced off.
    t_need = nt * tt + H
    x_eff = jnp.pad(x_eff, ((0, 0), (0, t_need - x_eff.shape[1]), (0, 0)))

    kernel = functools.partial(
        _conv1d_kernel, k_taps=k_eff, dilation=dil_eff, tt=tt,
        fuse_taps=(c_in_eff % 128 == 0))

    flops = 2 * B * T_out * K * C_in * C_out
    bytes_accessed = (B * T * C_in + C_out * C_in * K + C_out
                      + B * T_out * C_out) * itemsize

    out_full = pl.pallas_call(
        kernel,
        out_shape=jax.ShapeDtypeStruct((B, nt * tt, c_out_p), dtype),
        grid_spec=pltpu.PrefetchScalarGridSpec(
            num_scalar_prefetch=0,
            grid=(B, nt),
            in_specs=[
                pl.BlockSpec((1, tt, c_in_eff), lambda b, t: (b, t, 0)),
                pl.BlockSpec((1, H, c_in_eff), lambda b, t: (b, (t + 1) * hb, 0)),
                pl.BlockSpec((k_eff * c_in_eff, c_out_p), lambda b, t: (0, 0)),
                pl.BlockSpec((1, c_out_p), lambda b, t: (0, 0)),
            ],
            out_specs=pl.BlockSpec((1, tt, c_out_p), lambda b, t: (b, t, 0)),
            scratch_shapes=[pltpu.VMEM((tt + H, c_in_eff), dtype)],
        ),
        compiler_params=pltpu.CompilerParams(
            dimension_semantics=("parallel", "parallel"),
            vmem_limit_bytes=32 * 1024 * 1024,
        ),
        cost_estimate=pl.CostEstimate(
            flops=flops, transcendentals=0, bytes_accessed=bytes_accessed),
    )(x_eff, x_eff, w2d, b2d)

    # TODO(synk): optionally cast operands to bf16 (f32 accumulate) on v6e/v7x when the
    # caller's error budget allows; kept f32 here to preserve the module's numerics.
    return out_full[:, :T_out, :C_out]


if __name__ == "__main__":
    def reference(x, w, b, stride, padding, dilation):
        # PyTorch forward reproduced with lax: transpose -> NCL conv -> transpose (+bias).
        y = lax.conv_general_dilated(
            jnp.transpose(x, (0, 2, 1)), w,
            window_strides=(stride,), padding=[(padding, padding)],
            rhs_dilation=(dilation,),
            dimension_numbers=("NCH", "OIH", "NCH"),
            precision=lax.Precision.HIGHEST)
        return jnp.transpose(y, (0, 2, 1)) + b[None, None, :]

    key = jax.random.PRNGKey(0)
    configs = [
        # (B,  T, C_in, C_out, K, stride, pad, dilation)
        (2, 16,  32,  32, 3, 1, 1, 1),   # sub-128 channels -> K accumulating dots
        (2, 32, 128, 128, 3, 1, 2, 2),   # lane-aligned -> fused (TT, K*C_in) single matmul
        (2, 16,  32,  32, 3, 2, 1, 1),   # stride 2 -> wrapper polyphase + plain matmul
    ]
    for cfg in configs:
        B, T, C_in, C_out, K, stride, pad, dil = cfg
        key, kx, kw, kb = jax.random.split(key, 4)
        x = jax.random.normal(kx, (B, T, C_in), jnp.float32)
        fan_in, fan_out = C_in * K, C_out * K
        limit = (6.0 / (fan_in + fan_out)) ** 0.5
        w = jax.random.uniform(kw, (C_out, C_in, K), jnp.float32, -limit, limit)
        b = jax.random.uniform(kb, (C_out,), jnp.float32, -0.1, 0.1)

        out = jax.block_until_ready(
            conv1d_pallas(x, w, b, stride=stride, padding=pad, dilation=dil))

        T_out = (T + 2 * pad - dil * (K - 1) - 1) // stride + 1
        assert out.shape == (B, T_out, C_out), (cfg, out.shape)
        ref = reference(x, w, b, stride, pad, dil)
        err = float(jnp.max(jnp.abs(out - ref)))
        assert jnp.allclose(out, ref, atol=1e-3, rtol=1e-3), (cfg, err)

    print("KERNEL_OK")
</pallas_src>

<mosaic_0001>
module attributes {stable_mosaic.version = 11 : i64} {
  func.func @_conv1d_kernel(%arg0: i32, %arg1: i32, %arg2: memref<1x16x32xf32, #tpu.memory_space<vmem>>, %arg3: memref<1x8x32xf32, #tpu.memory_space<vmem>>, %arg4: memref<96x128xf32, #tpu.memory_space<vmem>>, %arg5: memref<1x128xf32, #tpu.memory_space<vmem>>, %arg6: memref<1x16x128xf32, #tpu.memory_space<vmem>>, %arg7: memref<24x32xf32, #tpu.memory_space<vmem>>) attributes {dimension_semantics = [#tpu.dimension_semantics<parallel>, #tpu.dimension_semantics<parallel>], iteration_bounds = array<i64: 2, 1>, scalar_prefetch = 0 : i64, scratch_operands = 1 : i64, tpu.core_type = #tpu.core_type<tc>, window_params = [{transform_indices = @transform_0, window_bounds = array<i64: 1, 16, 32>}, {transform_indices = @transform_1, window_bounds = array<i64: 1, 8, 32>}, {pipeline_mode = #tpu.pipeline_mode<synchronous>, transform_indices = @transform_2, window_bounds = array<i64: 96, 128>}, {pipeline_mode = #tpu.pipeline_mode<synchronous>, transform_indices = @transform_3, window_bounds = array<i64: 1, 128>}, {transform_indices = @transform_4, window_bounds = array<i64: 1, 16, 128>}]} {
    %c0 = arith.constant 0 : index
    %c0_0 = arith.constant 0 : index
    %c0_1 = arith.constant 0 : index
    %0 = vector.load %arg2[%c0, %c0_0, %c0_1] : memref<1x16x32xf32, #tpu.memory_space<vmem>>, vector<1x16x32xf32>
    %1 = vector.shape_cast %0 : vector<1x16x32xf32> to vector<16x32xf32>
    %c0_2 = arith.constant 0 : index
    %c0_3 = arith.constant 0 : index
    %2 = vector.load %arg7[%c0_2, %c0_3] : memref<24x32xf32, #tpu.memory_space<vmem>>, vector<16x32xf32>
    tpu.vector_store %arg7[%c0_2, %c0_3], %1 {strides = array<i32>} : memref<24x32xf32, #tpu.memory_space<vmem>>, vector<16x32xf32>,
    %c0_4 = arith.constant 0 : index
    %c0_5 = arith.constant 0 : index
    %c0_6 = arith.constant 0 : index
    %3 = vector.load %arg3[%c0_4, %c0_5, %c0_6] : memref<1x8x32xf32, #tpu.memory_space<vmem>>, vector<1x8x32xf32>
    %4 = vector.shape_cast %3 : vector<1x8x32xf32> to vector<8x32xf32>
    %c16 = arith.constant 16 : index
    %c0_7 = arith.constant 0 : index
    %5 = vector.load %arg7[%c16, %c0_7] : memref<24x32xf32, #tpu.memory_space<vmem>>, vector<8x32xf32>
    tpu.vector_store %arg7[%c16, %c0_7], %4 {strides = array<i32>} : memref<24x32xf32, #tpu.memory_space<vmem>>, vector<8x32xf32>,
    %cst = arith.constant 0.000000e+00 : f32
    %6 = vector.broadcast %cst : f32 to vector<16x128xf32>
    %c0_8 = arith.constant 0 : index
    %c0_9 = arith.constant 0 : index
    %7 = vector.load %arg7[%c0_8, %c0_9] : memref<24x32xf32, #tpu.memory_space<vmem>>, vector<16x32xf32>
    %c0_10 = arith.constant 0 : index
    %c0_11 = arith.constant 0 : index
    %8 = vector.load %arg4[%c0_10, %c0_11] : memref<96x128xf32, #tpu.memory_space<vmem>>, vector<32x128xf32>
    %cst_12 = arith.constant dense<0.000000e+00> : vector<16x128xf32>
    %9 = tpu.matmul %7, %8, %cst_12 {dimension_numbers = #tpu.dot_dimension_numbers<[1], [0], [0], [1], [0, 0, 1, 1], [], []>} : vector<16x32xf32>, vector<32x128xf32>, vector<16x128xf32> -> vector<16x128xf32>
    %10 = arith.addf %6, %9 : vector<16x128xf32>
    %c1 = arith.constant 1 : index
    %c0_13 = arith.constant 0 : index
    %11 = vector.load %arg7[%c1, %c0_13] : memref<24x32xf32, #tpu.memory_space<vmem>>, vector<16x32xf32>
    %c32 = arith.constant 32 : index
    %c0_14 = arith.constant 0 : index
    %12 = vector.load %arg4[%c32, %c0_14] : memref<96x128xf32, #tpu.memory_space<vmem>>, vector<32x128xf32>
    %cst_15 = arith.constant dense<0.000000e+00> : vector<16x128xf32>
    %13 = tpu.matmul %11, %12, %cst_15 {dimension_numbers = #tpu.dot_dimension_numbers<[1], [0], [0], [1], [0, 0, 1, 1], [], []>} : vector<16x32xf32>, vector<32x128xf32>, vector<16x128xf32> -> vector<16x128xf32>
    %14 = arith.addf %10, %13 : vector<16x128xf32>
    %c2 = arith.constant 2 : index
    %c0_16 = arith.constant 0 : index
    %15 = vector.load %arg7[%c2, %c0_16] : memref<24x32xf32, #tpu.memory_space<vmem>>, vector<16x32xf32>
    %c64 = arith.constant 64 : index
    %c0_17 = arith.constant 0 : index
    %16 = vector.load %arg4[%c64, %c0_17] : memref<96x128xf32, #tpu.memory_space<vmem>>, vector<32x128xf32>
    %cst_18 = arith.constant dense<0.000000e+00> : vector<16x128xf32>
    %17 = tpu.matmul %15, %16, %cst_18 {dimension_numbers = #tpu.dot_dimension_numbers<[1], [0], [0], [1], [0, 0, 1, 1], [], []>} : vector<16x32xf32>, vector<32x128xf32>, vector<16x128xf32> -> vector<16x128xf32>
    %18 = arith.addf %14, %17 : vector<16x128xf32>
    %c0_19 = arith.constant 0 : index
    %c0_20 = arith.constant 0 : index
    %19 = vector.load %arg5[%c0_19, %c0_20] : memref<1x128xf32, #tpu.memory_space<vmem>>, vector<1x128xf32>
    %20 = vector.broadcast %19 : vector<1x128xf32> to vector<16x128xf32>
    %21 = arith.addf %18, %20 : vector<16x128xf32>
    %c0_21 = arith.constant 0 : index
    %c0_22 = arith.constant 0 : index
    %c0_23 = arith.constant 0 : index
    %22 = vector.load %arg6[%c0_21, %c0_22, %c0_23] : memref<1x16x128xf32, #tpu.memory_space<vmem>>, vector<1x16x128xf32>
    %23 = vector.shape_cast %22 : vector<1x16x128xf32> to vector<16x128xf32>
    %24 = vector.shape_cast %21 : vector<16x128xf32> to vector<1x16x128xf32>
    tpu.vector_store %arg6[%c0_21, %c0_22, %c0_23], %24 {strides = array<i32>} : memref<1x16x128xf32, #tpu.memory_space<vmem>>, vector<1x16x128xf32>,
    return
  }
  func.func @transform_0(%arg0: i32, %arg1: i32) -> (i32, i32, i32) {
    %c0_i32 = arith.constant 0 : i32
    %c0_i32_0 = arith.constant 0 : i32
    return %arg0, %arg1, %c0_i32 : i32, i32, i32
  }
  func.func @transform_1(%arg0: i32, %arg1: i32) -> (i32, i32, i32) {
    %c1_i32 = arith.constant 1 : i32
    %0 = arith.addi %arg1, %c1_i32 : i32
    %c2_i32 = arith.constant 2 : i32
    %1 = arith.muli %0, %c2_i32 : i32
    %c0_i32 = arith.constant 0 : i32
    %c0_i32_0 = arith.constant 0 : i32
    return %arg0, %1, %c0_i32 : i32, i32, i32
  }
  func.func @transform_2(%arg0: i32, %arg1: i32) -> (i32, i32) {
    %c0_i32 = arith.constant 0 : i32
    %c0_i32_0 = arith.constant 0 : i32
    %c0_i32_1 = arith.constant 0 : i32
    return %c0_i32, %c0_i32_0 : i32, i32
  }
  func.func @transform_3(%arg0: i32, %arg1: i32) -> (i32, i32) {
    %c0_i32 = arith.constant 0 : i32
    %c0_i32_0 = arith.constant 0 : i32
    %c0_i32_1 = arith.constant 0 : i32
    return %c0_i32, %c0_i32_0 : i32, i32
  }
  func.func @transform_4(%arg0: i32, %arg1: i32) -> (i32, i32, i32) {
    %c0_i32 = arith.constant 0 : i32
    %c0_i32_0 = arith.constant 0 : i32
    return %arg0, %arg1, %c0_i32 : i32, i32, i32
  }
}

</mosaic_0001>

<bundles_post_ra>
// kernel: tpu_custom_call.1
= control target key start
LH: loop header
LB: loop body
LE: loop exit
PB: predicated region body
PF: predicated region fallthrough
CT: control target
= control target key end

     0   :  { %s1403_s0 = inlined_call_operand.hbm [shape: f32[2,24,32], index: 0, kind: input, shape index: {}]   ;;  %s1404_s1 = inlined_call_operand.hbm [shape: f32[2,24,32], index: 1, kind: input, shape index: {}]   ;;  %s1405_s2 = inlined_call_operand.hbm [shape: f32[96,128], index: 2, kind: input, shape index: {}]   ;;  %s1406_s3 = inlined_call_operand.vmem [shape: f32[1,128], index: 3, kind: input, shape index: {}]   ;;  %s1407_s4 = inlined_call_operand.hbm [shape: f32[2,16,128], index: 4, kind: output, shape index: {}]  }
   0x1   :  { %1416 = sst [smem:[#allocation17_spill]] %s1403_s0 }
   0x2   :  { %1417 = sst [smem:[#allocation18_spill]] %s1405_s2 }
   0x3   :  { %9 = vsyncpa [#allocation4], 0 }
   0x4   :  { %11 = vsyncpa [#allocation4 + $0x1], 0 }
   0x5   :  { %12 = vsyncpa [#allocation7], 0 }
   0x6   :  { %14 = vsyncpa [#allocation7 + $0x1], 0 }
   0x7   :  { %15 = vsyncpa [#allocation5], 0 }
   0x8   :  { %17 = vsyncpa [#allocation5 + $0x1], 0  ;;  %s1132_s15 = smov 0   ;;  %s1134_s16 = smov 0  }
   0x9   :  { %s1136_s17 = smov 0   ;;  %s1138_s18 = smov 0  }
   0xa   :  { %s1140_s19 = smov 0   ;;  %s1142_s20 = smov 0  }
   0xb LB: > { %1418 = sst [smem:[#allocation14_spill]] %s1085_s17  ;;  %s1163_s21 = sadd.s32 4294967295, %s1097_s20   ;;  %s1097_s20 = sphi %s1142_s20, %s23_s20   ;;  %s1093_s19 = sphi %s1140_s19, %s1446_s19   ;;  %s1089_s18 = sphi %s1138_s18, %s1445_s18   ;;  %s1085_s17 = sphi %s1136_s17, %s1441_s17   ;;  %s1081_s16 = sphi %s1134_s16, %s1444_s16   ;;  %s1077_s15 = sphi %s1132_s15, %s1443_s15  }
   0xc   : > { %s730_s22 = sadd.s32 4294967294, %s1097_s20   ;;  %p57_p0 = scmp.ne.s32.totalorder %s1081_s16, %s1077_s15 }
   0xd   : > { %p1408_p1 = scmp.eq.s32.totalorder %s1163_s21, 0  ;;  %p163_p3 = scmp.eq.s32.totalorder %s730_s22, 1 }
   0xe   : > { %p731_p5 = scmp.ge.s32.totalorder %s1097_s20, 1  ;;  %p170_p7 = scmp.lt.s32.totalorder %s1097_s20, 3 }
   0xf   : > { %p1172_p4 = por %p1408_p1, %p57_p0  ;;  %p1177_p6 = por %p163_p3, %p57_p0 }
  0x10   : > { %p1182_p8 = pnand %p731_p5, %p170_p7  ;;  %s1099_s26 = smov [#allocation8]  }
  0x11   : > { %s1419_s23 = scalar_select %p1172_p4, 1, 0 }
  0x12   : > { %s1420_s24 = scalar_select %p1177_p6, 1, 0 }
  0x13   : > { %s1421_s25 = scalar_select %p1182_p8, 1, 0 }
  0x14   : > { %s182_s27 = sshll.u32 %s1099_s26, 4  ;;  %p846_p9 = pneg %p1182_p8  ;;  %s183_s27 = int_to_ptr.vmem [resolvable:$true] %s182_s27 }
  0x15   : > { %s35_s29 = sadd.s32 1, %s1093_s19  ;;  %s1423_s2 = sld [smem:[#allocation18_spill]] }
  0x16   : > { %p1191_p11 = pnand %p846_p9, %p1408_p1 }
  0x18   : > { %p920_p13 = pneg %p1191_p11 }
  0x1b   : > { %s918_s6 = scalar_lea.hbm %s1423_s2, 1536 }
  0x1c   : > { %p919_p12 = scmp.ne.s32.totalorder %s1423_s2, %s918_s6  ;;  %p925_p5 = scmp.lt.u32.totalorder %s918_s6, %s1423_s2 }
  0x1e   : > { %p921_p0 = pnand %p920_p13, %p919_p12 }
  0x20   : > { %p922_p3 = pneg %p921_p0 }
  0x22   : > { %p927_p7 = pnand %p925_p5, %p922_p3 }
  0x24   : > { %930 = shalt.err (!%p927_p7)
}
  0x25   : > { %s931_s11 = scalar_lea.vmem %s183_s27, 1536  ;;  %p939_p2 = scmp.lt.s32.totalorder %s183_s27, %s183_s27 }
  0x26   : > { %p932_p9 = scmp.ne.s32.totalorder %s183_s27, %s931_s11  ;;  %p940_p6 = scmp.lt.s32.totalorder %s931_s11, %s931_s11 }
  0x28   : > { %p934_p10 = pnand %p932_p9, %p920_p13  ;;  %p941_p4 = por %p940_p6, %p939_p2 }
  0x2a   : > { %p935_p1 = pneg %p934_p10 }
  0x2c   : > { %p942_p8 = pnand %p941_p4, %p935_p1 }
  0x2e   : > { %945 = shalt.err (!%p942_p8)
}
  0x2f   : > { %s1412_s12 = smov 128   ;;  %s1101_s13 = smov 8  }
  0x30   : > { %849 = dma.hbm_to_vmem [thread:$0]  (!%p1191_p11), %s1423_s2, 1536, %s183_s27, [#allocation7], %s1412_s12, %s1412_s12, %s1101_s13  }
  0x31   : > { %p37_p1 = scmp.ge.s32.totalorder %s35_s29, 2  ;;  %s44_s26 = sadd.s32 1, %s1085_s17 }
  0x32   : > { %p51_p2 = scmp.ne.s32.totalorder %s1085_s17, %s1081_s16  ;;  %p52_p4 = scmp.eq.s32.totalorder %s1097_s20, 0 }
  0x33   : > { %s1448_s29 = smov (%p37_p1, %s35_s29), 0  ;;  %p1425_p8 = scmp.eq.s32.totalorder %s1163_s21, 1 }
  0x34   : > { %1424 = sst [smem:[#allocation15_spill]] %s1448_s29  ;;  %p53_p6 = por %p52_p4, %p51_p2 }
  0x35   : > { %p1223_p10 = por %p1425_p8, %p51_p2  ;;  %s39_s30 = ssub.s32 %s1093_s19, %s1448_s29 }
  0x36   : > { %p862_p12 = scmp.lt.s32.totalorder %s1097_s20, 2  ;;  %p42_p13 = scmp.eq.s32.totalorder %s39_s30, 0 }
  0x37   : > { %s1426_s28 = scalar_select %p1223_p10, 1, 0 }
  0x38   : > { %s1231_s5 = sand.u32 1, %s1085_s17   ;;  %s1411_s7 = smul.u32 384, %s1093_s19 }
  0x39   : > { %s734_s27 = sshll.u32 %s1231_s5, 4  ;;  %p1238_p11 = pnand %p862_p12, %p53_p6 }
  0x3a   : > { %s1235_s6 = scalar_select %p42_p13, %s1085_s17, %s44_s26  }
  0x3b   : > { %s203_s8 = scalar_lea.vmem [#allocation3], %s734_s27  ;;  %s1429_s0 = sld [smem:[#allocation17_spill]] }
  0x3c   : > { %1427 = sst [smem:[#allocation16_spill]] %s1235_s6  ;;  %s218_s9 = sshll.u32 %s203_s8, 4  ;;  %s1249_s9 = int_to_ptr.vmem [resolvable:$true] %s218_s9 }
  0x3d   : > { %s200_s30 = scalar_lea.sflag [#allocation4], %s1231_s5  ;;  %p948_p3 = pneg %p1238_p11 }
  0x41   : > { %s1247_s22 = scalar_lea.hbm %s1429_s0, %s1411_s7  ;;  %s951_s14 = scalar_lea.hbm %s1429_s0, 768 }
  0x42   : > { %s946_s27 = scalar_lea.hbm %s1247_s22, 256  ;;  %p952_p9 = scmp.lt.u32.totalorder %s1247_s22, %s1429_s0 }
  0x43   : > { %p947_p0 = scmp.ne.s32.totalorder %s1247_s22, %s946_s27  ;;  %p953_p1 = scmp.lt.u32.totalorder %s951_s14, %s946_s27 }
  0x44   : > { %p955_p4 = scmp.lt.u32.totalorder %s946_s27, %s1247_s22 }
  0x45   : > { %p949_p5 = pnand %p948_p3, %p947_p0  ;;  %p954_p2 = por %p953_p1, %p952_p9 }
  0x47   : > { %p950_p7 = pneg %p949_p5  ;;  %p956_p6 = por %p955_p4, %p954_p2 }
  0x49   : > { %p957_p8 = pnand %p956_p6, %p950_p7 }
  0x4b   : > { %960 = shalt.err (!%p957_p8)
}
  0x4c   : > { %s961_s26 = scalar_lea.vmem %s1249_s9, 256  ;;  %s1102_s8 = smov [#allocation3]  }
  0x4d   : > { %p962_p12 = scmp.ne.s32.totalorder %s1249_s9, %s961_s26  ;;  %s966_s11 = sshll.u32 %s1102_s8, 4  ;;  %s967_s11 = int_to_ptr.vmem [resolvable:$false] %s966_s11 }
  0x4e   : > { %s968_s12 = scalar_lea.vmem %s967_s11, 512  ;;  %p969_p5 = scmp.lt.s32.totalorder %s1249_s9, %s967_s11 }
  0x4f   : > { %p964_p13 = pnand %p962_p12, %p948_p3  ;;  %p970_p9 = scmp.lt.s32.totalorder %s968_s12, %s961_s26 }
  0x51   : > { %p965_p0 = pneg %p964_p13  ;;  %p971_p1 = por %p970_p9, %p969_p5 }
  0x53   : > { %p972_p2 = pnand %p971_p1, %p965_p0 }
  0x55   : > { %975 = shalt.err (!%p972_p2)
}
  0x56   : > { %s1430_s7 = smov 128   ;;  %s736_s27 = sshll.u32 %s1231_s5, 3 }
  0x57   : > { %853 = dma.hbm_to_vmem [thread:$0]  (!%p1238_p11), %s1247_s22, 256, %s1249_s9, %s200_s30, %s1430_s7, %s1430_s7, %s1101_s13  }
  0x58   : > { %s1431_s14 = smul.u32 384, %s1093_s19  ;;  %s232_s0 = scalar_lea.vmem [#allocation6], %s736_s27 }
  0x59   : > { %s243_s2 = sshll.u32 %s232_s0, 4  ;;  %s1432_s29 = sand.u32 1, %s1097_s20   ;;  %s244_s2 = int_to_ptr.vmem [resolvable:$true] %s243_s2 }
  0x5a   : > { %s651_s11 = scalar_lea.hbm %s1404_s1, %s1431_s14  ;;  %s229_s6 = scalar_lea.sflag [#allocation7], %s1432_s29 }
  0x5b   : > { %s1289_s12 = scalar_lea.hbm %s651_s11, 256  ;;  %s1006_s17 = scalar_lea.hbm %s651_s11, 384 }
  0x5c   : > { %p977_p7 = scmp.ne.s32.totalorder %s1289_s12, %s1006_s17  ;;  %s981_s9 = scalar_lea.hbm %s1404_s1, 768 }
  0x5d   : > { %p982_p8 = scmp.lt.u32.totalorder %s1289_s12, %s1404_s1  ;;  %p983_p12 = scmp.lt.u32.totalorder %s981_s9, %s1006_s17 }
  0x5e   : > { %p979_p4 = pnand %p977_p7, %p948_p3  ;;  %p985_p0 = scmp.lt.u32.totalorder %s1006_s17, %s1289_s12 }
  0x5f   : > { %p984_p13 = por %p983_p12, %p982_p8 }
  0x60   : > { %p980_p6 = pneg %p979_p4 }
  0x61   : > { %p986_p5 = por %p985_p0, %p984_p13 }
  0x63   : > { %p987_p9 = pnand %p986_p5, %p980_p6 }
  0x65   : > { %990 = shalt.err (!%p987_p9)
}
  0x66   : > { %s991_s0 = scalar_lea.vmem %s244_s2, 128  ;;  %s1103_s29 = smov [#allocation6]  }
  0x67   : > { %p992_p1 = scmp.ne.s32.totalorder %s244_s2, %s991_s0  ;;  %s996_s7 = sshll.u32 %s1103_s29, 4  ;;  %s997_s7 = int_to_ptr.vmem [resolvable:$false] %s996_s7 }
  0x68   : > { %s998_s27 = scalar_lea.vmem %s997_s7, 256  ;;  %p999_p4 = scmp.lt.s32.totalorder %s244_s2, %s997_s7 }
  0x69   : > { %p994_p2 = pnand %p992_p1, %p948_p3  ;;  %p1000_p10 = scmp.lt.s32.totalorder %s998_s27, %s991_s0 }
  0x6b   : > { %p995_p7 = pneg %p994_p2  ;;  %p1001_p8 = por %p1000_p10, %p999_p4 }
  0x6d   : > { %p1002_p12 = pnand %p1001_p8, %p995_p7 }
  0x6f   : > { %1005 = shalt.err (!%p1002_p12)
}
  0x70   : > { %856 = dma.hbm_to_vmem [thread:$0]  (!%p1238_p11), %s1289_s12, 128, %s244_s2, %s229_s6  }
  0x71   : > { %p1433_p6 = scmp.ne.s32.totalorder %s1421_s25, 0 }
  0x72   : > { %s1314_s17 = sand.u32 (!%p1433_p6), 1, %s1081_s16   ;;  %p1434_p10 = scmp.ne.s32.totalorder (!%p1433_p6), %s1419_s23, 0 }
  0x73   : > { %252 = sbr.rel (%p1433_p6) target bundleno = 381 (0x17d), region = 36  ;;  %s739_s14 = sshll.u32 (!%p1433_p6), %s1314_s17, 4 }
  0x74   : > { %s255_s26 = scalar_lea.sflag (!%p1433_p6), [#allocation4], %s1314_s17  ;;  %s258_s8 = scalar_lea.vmem (!%p1433_p6), [#allocation3], %s739_s14 }
  0x7a   : > { %1060 = dma.done.wait (%p1434_p10), %s255_s26, 256  }
  0x7b   : > { %1062 = vsyncadd (%p1434_p10), %s255_s26, 4294967040  ;;  %s263_s2 = sand.u32 1, %s1163_s21   ;;  %s740_s25 = sshll.u32 %s1314_s17, 3 }
  0x7c   : > { %s264_s6 = scalar_lea.sflag [#allocation7], %s263_s2  ;;  %s267_s10 = scalar_lea.vmem [#allocation6], %s740_s25 }
  0x7d   : > { %1064 = dma.done.wait (%p1434_p10), %s264_s6, 128  }
  0x7e   : > { %1066 = vsyncadd (%p1434_p10), %s264_s6, 4294967168  ;;  %p1435_p11 = scmp.eq.s32.totalorder %s1163_s21, 0 }
  0x80   : > { %1068 = dma.done.wait (%p1435_p11), [#allocation7], 1536   ;;  %p1436_p3 = pmov %p1435_p11 }
  0x81   : > { %vm311_vm0 = vcmask 261120   ;;  %v318_v0 = vld [vmem:[#allocation8] sm:$0xff]  ;;  %v319_v1 = vld [vmem:[#allocation8 + $0x8] sm:$0xff]  ;;  %v320_v2 = vld [vmem:[#allocation8 + $0x10] sm:$0xff]  ;;  %s300_s21 = scalar_lea.vmem [#allocation9], %s739_s14  ;;  %s755_s13 = sshll.u32 %s1089_s18, 8 }
  0x82   : > { %1070 = vsyncadd (%p1436_p3), [#allocation7], 4294965760  ;;  %v815_v3 = vpack.c.bf16 %v319_v1, %v318_v0  ;;  %v321_v4 = vld [vmem:[#allocation8 + $0x18] sm:$0xff]  ;;  %v309_v5 = vld [vmem:[%s258_s8] sm:$0xff]  ;;  %s606_s23 = sshll.u32 %s300_s21, 4  ;;  %s1354_s22 = scalar_lea.hbm %s1407_s4, %s755_s13  ;;  %s1349_s23 = int_to_ptr.vmem [resolvable:$true] %s606_s23 }
  0x83   : > { %v324_v6 = vld [vmem:[#allocation8 + $0x20] sm:$0xff]  ;;  %v819_v7 = vpack.c.bf16 %v321_v4, %v320_v2  ;;  %312 = vst.msk [vmem:[#allocation2] sm:$0xff] %vm311_vm0, %v309_v5  ;;  %v325_v8 = vld [vmem:[#allocation8 + $0x28] sm:$0xff]  ;;  %v326_v13 = vld [vmem:[#allocation8 + $0x30] sm:$0xff]  ;;  %s591_s30 = scalar_lea.sflag [#allocation5], %s1314_s17  ;;  %s1007_s0 = scalar_lea.vmem %s1349_s23, 256 }
  0x84   : > { %v310_v9 = vld [vmem:[%s258_s8 + $0x8] sm:$0xff]  ;;  %v492_v10 = vld [vmem:[#allocation8 + $0x40] sm:$0xff]  ;;  %816 = vmatprep.subr.bf16.mxu0 %v815_v3  ;;  %v807_v11 = vpack.c.bf16 %v325_v8, %v324_v6  ;;  %v314_v16 = vld [vmem:[%s267_s10] sm:$0xff]  ;;  %p1008_p13 = scmp.ne.s32.totalorder %s1349_s23, %s1007_s0  ;;  %p1437_p0 = scmp.ne.s32.totalorder %s1426_s28, 0 }
  0x85   : > { %313 = vst.msk [vmem:[#allocation2 + $0x8] sm:$0xff] %vm311_vm0, %v310_v9  ;;  %v493_v12 = vld [vmem:[#allocation8 + $0x48] sm:$0xff]  ;;  %v327_v14 = vld [vmem:[#allocation8 + $0x38] sm:$0xff]  ;;  %818 = vmatpush3.bf16.msra.mxu0 %v815_v3  ;;  %315 = vst.msk [vmem:[#allocation2 + $0x10] sm:$0xff] %vm311_vm0, %v314_v16  ;;  %s1104_s18 = smov [#allocation9]  }
  0x86   : > { %v811_v15 = vpack.c.bf16 %v327_v14, %v326_v13  ;;  %820 = vmatprep.subr.bf16.mxu0 %v819_v7  ;;  %808 = vmatprep.subr.bf16.mxu1 %v807_v11  ;;  %v823_v17 = vpack.c.bf16 %v493_v12, %v492_v10  ;;  %v494_v18 = vld [vmem:[#allocation8 + $0x50] sm:$0xff]  ;;  %v495_v19 = vld [vmem:[#allocation8 + $0x58] sm:$0xff]  ;;  %p1009_p5 = pnand %p1008_p13, %p1437_p0  ;;  %s1011_s29 = sshll.u32 %s1104_s18, 4  ;;  %s1012_s29 = int_to_ptr.vmem [resolvable:$false] %s1011_s29 }
  0x87   : > { %810 = vmatpush3.bf16.msra.mxu1 %v807_v11  ;;  %v827_v21 = vpack.c.bf16 %v495_v19, %v494_v18  ;;  %v749_v30 = vld [vmem:[%s1406_s3] ss:$0 sm:$0xff]  ;;  %s1013_s7 = scalar_lea.vmem %s1012_s29, 512  ;;  %p1014_p1 = scmp.lt.s32.totalorder %s1349_s23, %s1012_s29 }
  0x88   : > { %812 = vmatprep.subr.bf16.mxu1 %v811_v15  ;;  %p1010_p9 = pneg %p1009_p5  ;;  %p1015_p2 = scmp.lt.s32.totalorder %s1013_s7, %s1007_s0 }
  0x89   : > { %822 = vmatpush3.bf16.msra.mxu0 %v819_v7 }
  0x8a   : > { %v316_v20 = vld [vmem:[#allocation2] sm:$0xff]  ;;  %824 = vmatprep.subr.bf16.mxu0 %v823_v17  ;;  %p1016_p7 = por %p1015_p2, %p1014_p1 }
  0x8b   : > { %793 = vmatprep.mubr.msk.f32.mxu0 %vm311_vm0, %v316_v20  ;;  %814 = vmatpush3.bf16.msra.mxu1 %v811_v15 }
  0x8c   : > { %v317_v22 = vld [vmem:[#allocation2 + $0x8] sm:$0xff]  ;;  %p1017_p4 = pnand %p1016_p7, %p1010_p9 }
  0x8d   : > { %v322_v23 = vld [vmem:[#allocation2 + $0x1] sm:$0xff]  ;;  %794 = vmatmul.mubr.msk.f32.vlgmr.msra.gmra.mrb[0].mxu0 %vm311_vm0, %v317_v22  ;;  %v323_v25 = vld [vmem:[#allocation2 + $0x9] sm:$0xff] }
  0x8e   : > { %v490_v24 = vld [vmem:[#allocation2 + $0x2] sm:$0xff]  ;;  %782 = vmatprep.mubr.msk.f32.mxu1 %vm311_vm0, %v322_v23  ;;  %826 = vmatpush3.bf16.msra.mxu0 %v823_v17  ;;  %v491_v26 = vld [vmem:[#allocation2 + $0xa] sm:$0xff] }
  0x8f   : > { %804 = vmatprep.mubr.msk.f32.mxu0 %vm311_vm0, %v490_v24  ;;  %828 = vmatprep.subr.bf16.mxu0 %v827_v21 }
  0x90   : > { %783 = vmatmul.mubr.msk.f32.vlgmr.msra.gmra.mrb[0].mxu1 %vm311_vm0, %v323_v25 }
  0x92   : > { %830 = vmatpush3.bf16.msra.mxu0 %v827_v21 }
  0x95   : > { %805 = vmatmul.mubr.msk.f32.vlgmr.msra.gmra.mrb[0].mxu0 %vm311_vm0, %v491_v26 }
 0x163   : > { %v784_v27 = vpop.f32.mrb[0].mxu1 }
 0x164   : > { %v400_v28 = vpop.f32.mrb[1].mxu1 }
 0x168   : > { %v806_v29 = vpop.f32.mrb[0].mxu0 }
 0x169   : > { %v831_v31 = vadd.f32 %v806_v29, %v784_v27  ;;  %v568_v32 = vpop.f32.mrb[1].mxu0 }
 0x16a   : > { %v832_v33 = vadd.f32 %v568_v32, %v400_v28 }
 0x16b   : > { %v587_v34 = vadd.f32 %v831_v31, %v749_v30 }
 0x16c   : > { %v586_v35 = vadd.f32 %v832_v33, %v749_v30 }
 0x16d   : > { %589 = vst [vmem:[%s300_s21 + $0x8] sm:$0xff] %v587_v34 }
 0x16e   : > { %588 = vst [vmem:[%s300_s21] sm:$0xff] %v586_v35 }
 0x16f   : > { %1020 = shalt.err (!%p1017_p4)
}
 0x170   : > { %s1021_s27 = scalar_lea.hbm %s1354_s22, 256  ;;  %s1025_s8 = scalar_lea.hbm %s1407_s4, 512 }
 0x171   : > { %p1022_p8 = scmp.ne.s32.totalorder %s1354_s22, %s1021_s27  ;;  %p1026_p10 = scmp.lt.u32.totalorder %s1354_s22, %s1407_s4 }
 0x172   : > { %p1027_p11 = scmp.lt.u32.totalorder %s1025_s8, %s1021_s27  ;;  %p1029_p13 = scmp.lt.u32.totalorder %s1021_s27, %s1354_s22 }
 0x173   : > { %p1023_p12 = pnand %p1022_p8, %p1437_p0 }
 0x174   : > { %p1028_p3 = por %p1027_p11, %p1026_p10 }
 0x175   : > { %p1024_p6 = pneg %p1023_p12 }
 0x176   : > { %p1030_p5 = por %p1029_p13, %p1028_p3 }
 0x178   : > { %p1031_p9 = pnand %p1030_p5, %p1024_p6 }
 0x17a   : > { %1034 = shalt.err (!%p1031_p9)
}
 0x17b   : > { %s1105_s6 = smov 128   ;;  %s1106_s10 = smov 8  }
 0x17c   : > { %844 = dma.vmem_to_hbm [thread:$0]  (%p1437_p0), %s1349_s23, 256, %s1354_s22, %s591_s30, %s1105_s6, %s1105_s6, %s1106_s10  }
 0x17d PF: > { %s621_s21 = sand.u32 1, %s1077_s15   ;;  %p1438_p1 = scmp.ne.s32.totalorder %s1420_s24, 0 }
 0x17e   : > { %p1439_p2 = scmp.ge.s32.totalorder %s1097_s20, 2  ;;  %s622_s11 = scalar_lea.sflag [#allocation5], %s621_s21 }
 0x180   : > { %p858_p7 = pnand %p1439_p2, %p1438_p1 }
 0x182   : > { %1072 = dma.done.wait (!%p858_p7), %s622_s11, 256  }
 0x183   : > { %1074 = vsyncadd (!%p858_p7), %s622_s11, 4294967040  ;;  %s23_s20 = sadd.s32 1, %s1097_s20   ;;  %s1440_s12 = sld [smem:[#allocation14_spill]] }
 0x184   : > { %p20_p4 = scmp.ge.s32.totalorder %s23_s20, 4   ;;  %s1441_s17 = sld [smem:[#allocation16_spill]] }
 0x185   : > { %s1442_s28 = sld [smem:[#allocation15_spill]]  ;;  %s1443_s15 = smov %s1081_s16 }
 0x186   : > { %s1445_s18 = smov %s1093_s19  ;;  %22 = sbr.rel (!%p20_p4) target bundleno = 11 (0xb), region = 98 }
 0x189   : > { %s1444_s16 = smov %s1440_s12 }
 0x18b   : > { %s1446_s19 = smov %s1442_s28 }
 0x18d   :  { %627 = vsyncpa [#allocation4], 1 }
 0x18e   :  { %629 = vsyncpa [#allocation4 + $0x1], 1 }
 0x18f   :  { %630 = vsyncpa [#allocation7], 1 }
 0x190   :  { %632 = vsyncpa [#allocation7 + $0x1], 1 }
 0x191   :  { %633 = vsyncpa [#allocation5], 1 }
 0x192   :  { %635 = vsyncpa [#allocation5 + $0x1], 1 }

</bundles_post_ra>
